<compile_context>
chip_gen: v7x
topology: tpu7x:2x2x1
jax: 0.10.0
libtpu: 0.0.40
codegen_flags: <defaults>
</compile_context>

<pallas_src>
import functools

import jax
import jax.numpy as jnp
from jax.experimental import pallas as pl
from jax.experimental.pallas import tpu as pltpu


def _pick_tbp(bp, n, target_rows=512):
    """How many (b, p) slabs to process per grid step.

    Largest divisor t of bp such that t*n <= target_rows and t*n is a
    multiple of 8 (sublane rule), preferring at least two grid steps so both
    TensorCores (v7x megacore) get work.  Falls back to full extent (always a
    legal block) if no divisor satisfies the constraints.
    """
    candidates = [t for t in range(1, bp + 1)
                  if bp % t == 0 and (t * n) % 8 == 0 and t * n <= target_rows]
    if not candidates:
        return bp
    multi = [t for t in candidates if bp // t >= 2]
    return max(multi) if multi else max(candidates)


def _attention_kernel(x_ref, wqkv_ref, wout_ref, bout_ref, o_ref, *,
                      tbp, n, heads, head_dim, mxu_dtype):
    """One grid step = `tbp` (batch, patch) slabs of n tokens each.

    x_ref    : (tbp*n, dim)     activations (already cast to mxu_dtype)
    wqkv_ref : (dim, 3*inner)   qkv weights; scale pre-folded into Q columns
    wout_ref : (inner, dim)     output projection weights
    bout_ref : (1, dim)         output projection bias (f32)
    o_ref    : (tbp*n, dim)
    """
    inner = heads * head_dim

    x2 = x_ref[...]                                            # (tbp*n, dim)

    # --- QKV projection: one big 2-D MXU matmul, M = tbp*n -----------------
    qkv = jnp.dot(x2, wqkv_ref[...],
                  preferred_element_type=jnp.float32)          # (tbp*n, 3*inner) f32
    # Cast once for all downstream MXU operands (no-op when mxu_dtype is f32).
    qkv3 = qkv.astype(mxu_dtype).reshape(tbp, n, 3 * inner)    # leading-dim split only

    w_out = wout_ref[...]                                      # (inner, dim)

    acc = None
    # `heads` is small and static -> unrolled; every matmul below is batched
    # over the tbp slabs, so there is no per-slab loop or per-slab grid step.
    for h in range(heads):
        q = qkv3[:, :, 0 * inner + h * head_dim: 0 * inner + (h + 1) * head_dim]
        k = qkv3[:, :, 1 * inner + h * head_dim: 1 * inner + (h + 1) * head_dim]
        v = qkv3[:, :, 2 * inner + h * head_dim: 2 * inner + (h + 1) * head_dim]

        # scores; the 1/sqrt(head_dim) scale is already in the Q projection.
        dots = jnp.einsum('bqd,bkd->bqk', q, k,
                          preferred_element_type=jnp.float32)  # (tbp, n, n)

        # numerically stable softmax; reciprocal goes to the (idle) EUP slot.
        m = jnp.max(dots, axis=-1, keepdims=True)
        e = jnp.exp(dots - m)
        denom = jnp.sum(e, axis=-1, keepdims=True)
        attn = (e * pl.reciprocal(denom, approx=True)).astype(mxu_dtype)

        out_h = jnp.einsum('bqk,bkd->bqd', attn, v,
                           preferred_element_type=jnp.float32)  # (tbp, n, hd)

        # Fold the head back through its block-row of W_out and accumulate
        # instead of concatenating:  concat_h(out_h) @ W_out
        #                         == sum_h out_h @ W_out[h*hd:(h+1)*hd, :]
        out2 = out_h.reshape(tbp * n, head_dim)                 # leading-dim merge only
        contrib = jnp.dot(out2.astype(mxu_dtype),
                          w_out[h * head_dim:(h + 1) * head_dim, :],
                          preferred_element_type=jnp.float32)   # (tbp*n, dim)
        acc = contrib if acc is None else acc + contrib

    # bias added once on the whole 2-D block (single VPU pass).
    y = acc + bout_ref[...]
    o_ref[...] = y.astype(o_ref.dtype)


def mobilevit_attention(x, w_qkv, w_out, b_out, *, heads, head_dim,
                        compute_dtype=None, tbp=None):
    """x: (b, p, n, dim).  w_qkv: (dim, 3*heads*head_dim) [q|k|v, heads-major].
       w_out: (heads*head_dim, dim).  b_out: (1, dim).

    compute_dtype: optional MXU operand dtype (e.g. jnp.bfloat16 for v6e/v7x);
                   accumulation stays in float32.
    tbp: slabs per grid step (auto-chosen if None).
    """
    b, p, n, dim = x.shape
    inner = heads * head_dim
    assert w_qkv.shape == (dim, 3 * inner)
    assert w_out.shape == (inner, dim)
    assert b_out.shape == (1, dim)

    bp = b * p
    if tbp is None:
        tbp = _pick_tbp(bp, n)
    assert bp % tbp == 0, "tbp must divide b*p"
    if (tbp * n) % 8 != 0 and tbp != bp:
        tbp = bp  # block rows must be a multiple of 8 or the full extent

    out_dtype = x.dtype
    mxu_dtype = jnp.dtype(compute_dtype) if compute_dtype is not None else jnp.dtype(x.dtype)

    # Fold the 1/sqrt(head_dim) scale into the Q columns of the qkv weight
    # (one-time wrapper-side prep; removes per-tile elementwise scaling).
    scale = float(head_dim) ** -0.5
    w_qkv = w_qkv.at[:, :inner].multiply(scale)

    x_flat = x.reshape(bp * n, dim).astype(mxu_dtype)
    w_qkv_c = w_qkv.astype(mxu_dtype)
    w_out_c = w_out.astype(mxu_dtype)
    b_out_f32 = b_out.astype(jnp.float32)

    kernel = functools.partial(_attention_kernel, tbp=tbp, n=n,
                               heads=heads, head_dim=head_dim,
                               mxu_dtype=mxu_dtype)

    rows = tbp * n
    out_flat = pl.pallas_call(
        kernel,
        out_shape=jax.ShapeDtypeStruct((bp * n, dim), out_dtype),
        grid=(bp // tbp,),
        in_specs=[
            pl.BlockSpec((rows, dim), lambda i: (i, 0)),           # activations
            pl.BlockSpec((dim, 3 * inner), lambda i: (0, 0)),      # resident weights
            pl.BlockSpec((inner, dim), lambda i: (0, 0)),
            pl.BlockSpec((1, dim), lambda i: (0, 0)),
        ],
        out_specs=pl.BlockSpec((rows, dim), lambda i: (i, 0)),
        compiler_params=pltpu.CompilerParams(
            dimension_semantics=("parallel",)),
    )(x_flat, w_qkv_c, w_out_c, b_out_f32)

    return out_flat.reshape(b, p, n, dim)


def reference_attention(x, w_qkv, w_out, b_out, *, heads, head_dim):
    """Pure-JAX reference reproducing the PyTorch forward pass semantics."""
    b, p, n, dim = x.shape
    inner = heads * head_dim
    qkv = jnp.einsum('bpnd,de->bpne', x, w_qkv)
    q, k, v = jnp.split(qkv, 3, axis=-1)

    def to_heads(t):  # 'b p n (h d) -> b p h n d'
        return t.reshape(b, p, n, heads, head_dim).transpose(0, 1, 3, 2, 4)

    q, k, v = map(to_heads, (q, k, v))
    dots = jnp.einsum('bphnd,bphmd->bphnm', q, k) * (head_dim ** -0.5)
    attn = jax.nn.softmax(dots, axis=-1)
    out = jnp.einsum('bphnm,bphmd->bphnd', attn, v)
    out = out.transpose(0, 1, 3, 2, 4).reshape(b, p, n, inner)
    return jnp.einsum('bpni,id->bpnd', out, w_out) + b_out[0]


if __name__ == "__main__":
    # Small shapes consistent with the module's forward:
    #   x: (b=2, p=4, n=8, dim=32), heads=2, head_dim=16  => inner_dim=32
    b, p, n, dim = 2, 4, 8, 32
    heads, head_dim = 2, 16
    inner = heads * head_dim

    key = jax.random.PRNGKey(0)
    k_x, k_qkv, k_out, k_b = jax.random.split(key, 4)

    x = jax.random.normal(k_x, (b, p, n, dim), dtype=jnp.float32)
    # PyTorch nn.Linear stores (out, in); here weights are kept in (in, out).
    w_qkv = jax.random.normal(k_qkv, (dim, 3 * inner), dtype=jnp.float32) * 0.05
    w_out = jax.random.normal(k_out, (inner, dim), dtype=jnp.float32) * 0.05
    b_out = jax.random.normal(k_b, (1, dim), dtype=jnp.float32) * 0.05

    y_ref = reference_attention(x, w_qkv, w_out, b_out,
                                heads=heads, head_dim=head_dim)

    # float32 MXU path (tolerance loosened slightly for the approx reciprocal).
    y = mobilevit_attention(x, w_qkv, w_out, b_out,
                            heads=heads, head_dim=head_dim)
    y = jax.block_until_ready(y)
    assert y.shape == (b, p, n, dim)
    assert jnp.allclose(y, y_ref, atol=1e-3, rtol=1e-3), "f32 kernel mismatch vs reference"

    # bf16 MXU operands / f32 accumulation (v6e/v7x recommendation).
    y_bf16 = mobilevit_attention(x, w_qkv, w_out, b_out,
                                 heads=heads, head_dim=head_dim,
                                 compute_dtype=jnp.bfloat16)
    y_bf16 = jax.block_until_ready(y_bf16)
    assert jnp.allclose(y_bf16.astype(jnp.float32), y_ref,
                        atol=1e-1, rtol=1e-1), "bf16 kernel mismatch vs reference"

    # TODO(synk): train-mode nn.Dropout is not implemented (eval-mode identity here).
    print("KERNEL_OK")
</pallas_src>

<mosaic_0001>
module attributes {stable_mosaic.version = 11 : i64} {
  func.func @_attention_kernel(%arg0: i32, %arg1: memref<32x32xf32, #tpu.memory_space<vmem>>, %arg2: memref<32x96xf32, #tpu.memory_space<vmem>>, %arg3: memref<32x32xf32, #tpu.memory_space<vmem>>, %arg4: memref<1x32xf32, #tpu.memory_space<vmem>>, %arg5: memref<32x32xf32, #tpu.memory_space<vmem>>) attributes {dimension_semantics = [#tpu.dimension_semantics<parallel>], iteration_bounds = array<i64: 2>, scalar_prefetch = 0 : i64, scratch_operands = 0 : i64, tpu.core_type = #tpu.core_type<tc>, window_params = [{transform_indices = @transform_0, window_bounds = array<i64: 32, 32>}, {pipeline_mode = #tpu.pipeline_mode<synchronous>, transform_indices = @transform_1, window_bounds = array<i64: 32, 96>}, {pipeline_mode = #tpu.pipeline_mode<synchronous>, transform_indices = @transform_2, window_bounds = array<i64: 32, 32>}, {pipeline_mode = #tpu.pipeline_mode<synchronous>, transform_indices = @transform_3, window_bounds = array<i64: 1, 32>}, {transform_indices = @transform_4, window_bounds = array<i64: 32, 32>}]} {
    %c0 = arith.constant 0 : index
    %c0_0 = arith.constant 0 : index
    %0 = vector.load %arg1[%c0, %c0_0] : memref<32x32xf32, #tpu.memory_space<vmem>>, vector<32x32xf32>
    %c0_1 = arith.constant 0 : index
    %c0_2 = arith.constant 0 : index
    %1 = vector.load %arg2[%c0_1, %c0_2] : memref<32x96xf32, #tpu.memory_space<vmem>>, vector<32x96xf32>
    %cst = arith.constant dense<0.000000e+00> : vector<32x96xf32>
    %2 = tpu.matmul %0, %1, %cst {dimension_numbers = #tpu.dot_dimension_numbers<[1], [0], [0], [1], [0, 0, 1, 1], [], []>} : vector<32x32xf32>, vector<32x96xf32>, vector<32x96xf32> -> vector<32x96xf32>
    %3 = vector.shape_cast %2 : vector<32x96xf32> to vector<4x8x96xf32>
    %c0_3 = arith.constant 0 : index
    %c0_4 = arith.constant 0 : index
    %4 = vector.load %arg3[%c0_3, %c0_4] : memref<32x32xf32, #tpu.memory_space<vmem>>, vector<32x32xf32>
    %5 = vector.extract_strided_slice %3 {offsets = [0, 0, 0], sizes = [4, 8, 16], strides = [1, 1, 1]} : vector<4x8x96xf32> to vector<4x8x16xf32>
    %6 = vector.extract_strided_slice %3 {offsets = [0, 0, 32], sizes = [4, 8, 16], strides = [1, 1, 1]} : vector<4x8x96xf32> to vector<4x8x16xf32>
    %7 = vector.extract_strided_slice %3 {offsets = [0, 0, 64], sizes = [4, 8, 16], strides = [1, 1, 1]} : vector<4x8x96xf32> to vector<4x8x16xf32>
    "tpu.trace_start"() <{level = 10 : i32, message = "bqd,bkd->bqk"}> : () -> ()
    %cst_5 = arith.constant dense<0.000000e+00> : vector<4x8x8xf32>
    %8 = tpu.matmul %5, %6, %cst_5 {dimension_numbers = #tpu.dot_dimension_numbers<[2], [2], [1], [1], [0, 0, 0, 1, 1, 1], [0], [0]>} : vector<4x8x16xf32>, vector<4x8x16xf32>, vector<4x8x8xf32> -> vector<4x8x8xf32>
    "tpu.trace_stop"() : () -> ()
    %cst_6 = arith.constant dense<0xFF800000> : vector<4x8xf32>
    %9 = vector.multi_reduction <maximumf>, %8, %cst_6 [2] : vector<4x8x8xf32> to vector<4x8xf32>
    %10 = vector.shape_cast %9 : vector<4x8xf32> to vector<4x8x1xf32>
    %11 = vector.broadcast %10 : vector<4x8x1xf32> to vector<4x8x8xf32>
    %12 = arith.subf %8, %11 : vector<4x8x8xf32>
    %13 = math.exp %12 : vector<4x8x8xf32>
    %cst_7 = arith.constant dense<0.000000e+00> : vector<4x8xf32>
    %14 = vector.multi_reduction <add>, %13, %cst_7 [2] : vector<4x8x8xf32> to vector<4x8xf32>
    %15 = vector.shape_cast %14 : vector<4x8xf32> to vector<4x8x1xf32>
    %16 = tpu.reciprocal %15 {approx = true} : vector<4x8x1xf32> -> vector<4x8x1xf32>
    %17 = vector.broadcast %16 : vector<4x8x1xf32> to vector<4x8x8xf32>
    %18 = arith.mulf %13, %17 : vector<4x8x8xf32>
    "tpu.trace_start"() <{level = 10 : i32, message = "bqk,bkd->bqd"}> : () -> ()
    %cst_8 = arith.constant dense<0.000000e+00> : vector<4x8x16xf32>
    %19 = tpu.matmul %18, %7, %cst_8 {dimension_numbers = #tpu.dot_dimension_numbers<[2], [1], [1], [2], [0, 0, 0, 1, 1, 2], [0], [0]>} : vector<4x8x8xf32>, vector<4x8x16xf32>, vector<4x8x16xf32> -> vector<4x8x16xf32>
    "tpu.trace_stop"() : () -> ()
    %20 = vector.shape_cast %19 : vector<4x8x16xf32> to vector<32x16xf32>
    %21 = vector.extract_strided_slice %4 {offsets = [0, 0], sizes = [16, 32], strides = [1, 1]} : vector<32x32xf32> to vector<16x32xf32>
    %cst_9 = arith.constant dense<0.000000e+00> : vector<32x32xf32>
    %22 = tpu.matmul %20, %21, %cst_9 {dimension_numbers = #tpu.dot_dimension_numbers<[1], [0], [0], [1], [0, 0, 1, 1], [], []>} : vector<32x16xf32>, vector<16x32xf32>, vector<32x32xf32> -> vector<32x32xf32>
    %23 = vector.extract_strided_slice %3 {offsets = [0, 0, 16], sizes = [4, 8, 16], strides = [1, 1, 1]} : vector<4x8x96xf32> to vector<4x8x16xf32>
    %24 = vector.extract_strided_slice %3 {offsets = [0, 0, 48], sizes = [4, 8, 16], strides = [1, 1, 1]} : vector<4x8x96xf32> to vector<4x8x16xf32>
    %25 = vector.extract_strided_slice %3 {offsets = [0, 0, 80], sizes = [4, 8, 16], strides = [1, 1, 1]} : vector<4x8x96xf32> to vector<4x8x16xf32>
    "tpu.trace_start"() <{level = 10 : i32, message = "bqd,bkd->bqk"}> : () -> ()
    %cst_10 = arith.constant dense<0.000000e+00> : vector<4x8x8xf32>
    %26 = tpu.matmul %23, %24, %cst_10 {dimension_numbers = #tpu.dot_dimension_numbers<[2], [2], [1], [1], [0, 0, 0, 1, 1, 1], [0], [0]>} : vector<4x8x16xf32>, vector<4x8x16xf32>, vector<4x8x8xf32> -> vector<4x8x8xf32>
    "tpu.trace_stop"() : () -> ()
    %cst_11 = arith.constant dense<0xFF800000> : vector<4x8xf32>
    %27 = vector.multi_reduction <maximumf>, %26, %cst_11 [2] : vector<4x8x8xf32> to vector<4x8xf32>
    %28 = vector.shape_cast %27 : vector<4x8xf32> to vector<4x8x1xf32>
    %29 = vector.broadcast %28 : vector<4x8x1xf32> to vector<4x8x8xf32>
    %30 = arith.subf %26, %29 : vector<4x8x8xf32>
    %31 = math.exp %30 : vector<4x8x8xf32>
    %cst_12 = arith.constant dense<0.000000e+00> : vector<4x8xf32>
    %32 = vector.multi_reduction <add>, %31, %cst_12 [2] : vector<4x8x8xf32> to vector<4x8xf32>
    %33 = vector.shape_cast %32 : vector<4x8xf32> to vector<4x8x1xf32>
    %34 = tpu.reciprocal %33 {approx = true} : vector<4x8x1xf32> -> vector<4x8x1xf32>
    %35 = vector.broadcast %34 : vector<4x8x1xf32> to vector<4x8x8xf32>
    %36 = arith.mulf %31, %35 : vector<4x8x8xf32>
    "tpu.trace_start"() <{level = 10 : i32, message = "bqk,bkd->bqd"}> : () -> ()
    %cst_13 = arith.constant dense<0.000000e+00> : vector<4x8x16xf32>
    %37 = tpu.matmul %36, %25, %cst_13 {dimension_numbers = #tpu.dot_dimension_numbers<[2], [1], [1], [2], [0, 0, 0, 1, 1, 2], [0], [0]>} : vector<4x8x8xf32>, vector<4x8x16xf32>, vector<4x8x16xf32> -> vector<4x8x16xf32>
    "tpu.trace_stop"() : () -> ()
    %38 = vector.shape_cast %37 : vector<4x8x16xf32> to vector<32x16xf32>
    %39 = vector.extract_strided_slice %4 {offsets = [16, 0], sizes = [16, 32], strides = [1, 1]} : vector<32x32xf32> to vector<16x32xf32>
    %cst_14 = arith.constant dense<0.000000e+00> : vector<32x32xf32>
    %40 = tpu.matmul %38, %39, %cst_14 {dimension_numbers = #tpu.dot_dimension_numbers<[1], [0], [0], [1], [0, 0, 1, 1], [], []>} : vector<32x16xf32>, vector<16x32xf32>, vector<32x32xf32> -> vector<32x32xf32>
    %41 = arith.addf %22, %40 : vector<32x32xf32>
    %c0_15 = arith.constant 0 : index
    %c0_16 = arith.constant 0 : index
    %42 = vector.load %arg4[%c0_15, %c0_16] : memref<1x32xf32, #tpu.memory_space<vmem>>, vector<1x32xf32>
    %43 = vector.broadcast %42 : vector<1x32xf32> to vector<32x32xf32>
    %44 = arith.addf %41, %43 : vector<32x32xf32>
    %c0_17 = arith.constant 0 : index
    %c0_18 = arith.constant 0 : index
    %45 = vector.load %arg5[%c0_17, %c0_18] : memref<32x32xf32, #tpu.memory_space<vmem>>, vector<32x32xf32>
    tpu.vector_store %arg5[%c0_17, %c0_18], %44 {strides = array<i32>} : memref<32x32xf32, #tpu.memory_space<vmem>>, vector<32x32xf32>,
    return
  }
  func.func @transform_0(%arg0: i32) -> (i32, i32) {
    %c0_i32 = arith.constant 0 : i32
    %c0_i32_0 = arith.constant 0 : i32
    return %arg0, %c0_i32 : i32, i32
  }
  func.func @transform_1(%arg0: i32) -> (i32, i32) {
    %c0_i32 = arith.constant 0 : i32
    %c0_i32_0 = arith.constant 0 : i32
    %c0_i32_1 = arith.constant 0 : i32
    return %c0_i32, %c0_i32_0 : i32, i32
  }
  func.func @transform_2(%arg0: i32) -> (i32, i32) {
    %c0_i32 = arith.constant 0 : i32
    %c0_i32_0 = arith.constant 0 : i32
    %c0_i32_1 = arith.constant 0 : i32
    return %c0_i32, %c0_i32_0 : i32, i32
  }
  func.func @transform_3(%arg0: i32) -> (i32, i32) {
    %c0_i32 = arith.constant 0 : i32
    %c0_i32_0 = arith.constant 0 : i32
    %c0_i32_1 = arith.constant 0 : i32
    return %c0_i32, %c0_i32_0 : i32, i32
  }
  func.func @transform_4(%arg0: i32) -> (i32, i32) {
    %c0_i32 = arith.constant 0 : i32
    %c0_i32_0 = arith.constant 0 : i32
    return %arg0, %c0_i32 : i32, i32
  }
}

</mosaic_0001>

<bundles_post_ra>
// kernel: tpu_custom_call.1
= control target key start
LH: loop header
LB: loop body
LE: loop exit
PB: predicated region body
PF: predicated region fallthrough
CT: control target
= control target key end

     0   :  { %s2215_s15 = smov 0   ;;  %s2430_s0 = inlined_call_operand.vmem [shape: f32[64,32], index: 0, kind: input, shape index: {}]   ;;  %s2431_s1 = inlined_call_operand.vmem [shape: f32[32,96], index: 1, kind: input, shape index: {}]   ;;  %s2432_s2 = inlined_call_operand.vmem [shape: f32[32,32], index: 2, kind: input, shape index: {}]   ;;  %s2433_s3 = inlined_call_operand.vmem [shape: f32[1,32], index: 3, kind: input, shape index: {}]   ;;  %s2434_s4 = inlined_call_operand.vmem [shape: f32[64,32], index: 4, kind: output, shape index: {}]  }
   0x1 LB: > { %s1894_s16 = sadd.s32 4294967295, %s2181_s15   ;;  %p1898_p0 = scmp.ge.s32.totalorder %s2181_s15, 1  ;;  %s2181_s15 = sphi %s2215_s15, %s14_s15  }
   0x2   : > { %p163_p1 = scmp.lt.s32.totalorder %s2181_s15, 3 }
   0x4   : > { %p164_p2 = pnand %p1898_p0, %p163_p1 }
   0x5   : > { %v205_v0 = vld [vmem:[%s2431_s1] sm:$0xff] (!%p164_p2)  ;;  %v206_v1 = vld [vmem:[%s2431_s1 + $0x8] sm:$0xff] (!%p164_p2)  ;;  %v207_v2 = vld [vmem:[%s2431_s1 + $0x10] sm:$0xff] (!%p164_p2)  ;;  %s1899_s23 = sshll.u32 (!%p164_p2), %s1894_s16, 2  ;;  %vm209_vm0 = vcmask (!%p164_p2), 261120   ;;  %v2183_v10 = vmov (!%p164_p2), 0.0  }
   0x6   : > { %167 = sbr.rel (%p164_p2) target bundleno = 1903 (0x76f), region = 36  ;;  %v2108_v3 = vpack.c.bf16 (!%p164_p2), %v206_v1, %v205_v0  ;;  %v208_v4 = vld [vmem:[%s2431_s1 + $0x18] sm:$0xff] (!%p164_p2)  ;;  %p190_p3 = scmp.lt.s32.totalorder (!%p164_p2), %s1899_s23, 7  ;;  %2013 = vmatprep.subr.mxu1 (!%p164_p2), %v2183_v10  ;;  %vm2184_vm1 = vmmov (!%p164_p2), 0   ;;  %vm314_vm2 = vcmask (!%p164_p2), 130048   ;;  %vm620_vm3 = vcmask (!%p164_p2), 64512  }
   0x7   : > { %v2112_v5 = vpack.c.bf16 (!%p164_p2), %v208_v4, %v207_v2  ;;  %2015 = vmatprep.mubr.msk.f32.mxu1 (!%p164_p2), %vm2184_vm1, %v2183_v10  ;;  %s2185_s30 = smov (!%p164_p2), 96   ;;  %s2186_s5 = smov (!%p164_p2), 64  }
   0x8   : > { %2109 = vmatprep.subr.bf16.mxu0 (!%p164_p2), %v2108_v3  ;;  %s2187_s6 = smov (!%p164_p2), 80   ;;  %s2188_s7 = smov (!%p164_p2), 112  }
   0x9   : > { %2111 = vmatpush3.bf16.msra.mxu0 (!%p164_p2), %v2108_v3  ;;  %s2189_s8 = smov (!%p164_p2), 48  }
   0xa   : > { %2113 = vmatprep.subr.bf16.mxu0 (!%p164_p2), %v2112_v5 }
   0xd   : > { %s2436_s23 = smov (!%p190_p3, %s1899_s23), 7  ;;  %2115 = vmatpush3.bf16.msra.mxu0 %v2112_v5 }
   0xe   : > { %s1900_s26 = sshll.u32 %s2436_s23, 3  ;;  %2008 = vmatprep.subr.mxu0 %v2183_v10 }
   0xf   : > { %s193_s29 = scalar_lea.vmem %s2430_s0, %s1900_s26  ;;  %s199_s22 = scalar_lea.vmem %s2434_s4, %s1900_s26 }
  0x10   : > { %v201_v6 = vld [vmem:[%s193_s29] sm:$0xff]  ;;  %v202_v7 = vld [vmem:[%s193_s29 + $0x8] sm:$0xff]  ;;  %v203_v8 = vld [vmem:[%s193_s29 + $0x10] sm:$0xff] }
  0x11   : > { %2002 = vmatprep.mubr.msk.f32.mxu0 %vm209_vm0, %v201_v6  ;;  %v204_v9 = vld [vmem:[%s193_s29 + $0x18] sm:$0xff] }
  0x12   : > { %2003 = vmatmul.mubr.msk.f32.vlgmr.msra.gmra.mrb[0].mxu0 %vm209_vm0, %v202_v7 }
  0x13   : > { %2005 = vmatprep.mubr.msk.f32.mxu0 %vm209_vm0, %v203_v8 }
  0x16   : > { %2006 = vmatmul.mubr.msk.f32.gmra.mrb[2].mxu0 %vm209_vm0, %v204_v9 }
  0x17   : > { %2010 = vmatprep.mubr.msk.f32.mxu0 %vm2184_vm1, %v2183_v10 }
  0xe5   : > { %v2253_v11 = vpop.f32.mrb[0].mxu0 }
  0xe6   : > { %v2255_v12 = vpop.f32.mrb[1].mxu0 }
  0xe7   : > { %312 = vrot.lane.b32.xlu0 %v2255_v12, %s2185_s30 }
  0xe9   : > { %v2258_v13 = vpop.f32.mrb[2].mxu0 }
  0xea   : > { %v2260_v14 = vpop.f32.mrb[3].mxu0 }
  0xeb   : > { %390 = vrot.lane.b32.xlu0 %v2253_v11, %s2185_s30  ;;  %467 = vrot.lane.b32.xlu1 %v2260_v14, %s2185_s30 }
  0xef   : > { %741 = vrot.lane.b32.xlu0 %v2253_v11, %s2186_s5  ;;  %544 = vrot.lane.b32.xlu1 %v2258_v13, %s2185_s30 }
 0x159   : > { %v313_v15 = vpop.permute.xlu0 %312 }
 0x15a   : > { %2009 = vmatpush3.xpose.msk.msra.mxu0 %vm314_vm2, %v313_v15 }
 0x15b   : > { %2023 = vmatprep.subr.mxu0 %v2183_v10 }
 0x15d   : > { %2011 = vmatmul.mubr.msk.f32.vlgmr.msra.gmra.mrb[4].mxu0 %vm314_vm2, %v2255_v12  ;;  %v391_v16 = vpop.permute.xlu0 %390  ;;  %v468_v17 = vpop.permute.xlu1 %467 }
 0x15e   : > { %2014 = vmatpush3.xpose.msk.msra.mxu1 %vm314_vm2, %v391_v16  ;;  %2025 = vmatprep.mubr.msk.f32.mxu0 %vm2184_vm1, %v2183_v10 }
 0x15f   : > { %2018 = vmatprep.subr.mxu1 %v2183_v10 }
 0x161   : > { %2016 = vmatmul.mubr.msk.f32.vlgmr.msra.gmra.mrb[0].mxu1 %vm314_vm2, %v2253_v11  ;;  %v545_v18 = vpop.permute.xlu1 %544  ;;  %v742_v19 = vpop.permute.xlu0 %741 }
 0x162   : > { %2019 = vmatpush3.xpose.msk.msra.mxu1 %vm314_vm2, %v468_v17  ;;  %2024 = vmatpush3.xpose.msk.msra.mxu0 %vm314_vm2, %v545_v18 }
 0x163   : > { %2020 = vmatprep.mubr.msk.f32.mxu1 %vm2184_vm1, %v2183_v10  ;;  %2033 = vmatprep.subr.mxu0 %v2183_v10 }
 0x164   : > { %2028 = vmatprep.subr.mxu1 %v2183_v10 }
 0x165   : > { %2021 = vmatmul.mubr.msk.f32.vlgmr.msra.gmra.mrb[2].mxu1 %vm314_vm2, %v2260_v14  ;;  %2026 = vmatmul.mubr.msk.f32.vlgmr.msra.gmra.mrb[6].mxu0 %vm314_vm2, %v2258_v13 }
 0x166   : > { %2034 = vmatpush3.msra.mxu0 %v742_v19  ;;  %2030 = vmatprep.mubr.msk.f32.mxu1 %vm2184_vm1, %v2183_v10 }
 0x167   : > { %2035 = vmatprep.mubr.msk.f32.mxu0 %vm2184_vm1, %v2183_v10  ;;  %2043 = vmatprep.subr.mxu0 %v2183_v10 }
 0x230   : > { %v385_v20 = vpop.f32.mrb[4].mxu0 }
 0x231   : > { %v2012_v21 = vpop.f32.mrb[5].mxu0  ;;  %v621_v22 = vsel %vm620_vm3, %v385_v20, -inf }
 0x232   : > { %622 = vmax.xlane.f32.xlu0 %v621_v22 }
 0x234   : > { %v462_v23 = vpop.f32.mrb[0].mxu1 }
 0x235   : > { %v2017_v24 = vpop.f32.mrb[1].mxu1  ;;  %v624_v25 = vsel %vm620_vm3, %v462_v23, -inf }
 0x236   : > { %625 = vmax.xlane.f32.xlu1 %v624_v25 }
 0x238   : > { %v539_v26 = vpop.f32.mrb[2].mxu1  ;;  %v616_v27 = vpop.f32.mrb[6].mxu0 }
 0x239   : > { %v2022_v28 = vpop.f32.mrb[3].mxu1  ;;  %v2027_v29 = vpop.f32.mrb[7].mxu0  ;;  %v627_v30 = vsel %vm620_vm3, %v539_v26, -inf  ;;  %v630_v31 = vsel %vm620_vm3, %v616_v27, -inf }
 0x23a   : > { %628 = vmax.xlane.f32.xlu0 %v627_v30 }
 0x23e   : > { %631 = vmax.xlane.f32.xlu0 %v630_v31 }
 0x247   : > { %665 = vrot.lane.b32.xlu1 %v2255_v12, %s2186_s5 }
 0x24b   : > { %817 = vrot.lane.b32.xlu1 %v2260_v14, %s2186_s5 }
 0x24f   : > { %893 = vrot.lane.b32.xlu1 %v2258_v13, %s2186_s5 }
 0x253   : > { %1049 = vrot.lane.b32.xlu1 %v2253_v11, %s2187_s6 }
 0x254   : > { %971 = vrot.lane.b32.xlu0 %v2255_v12, %s2187_s6 }
 0x257   : > { %1047 = vrot.lane.b32.xlu1 %v2253_v11, %s2188_s7 }
 0x2bf   : > { %v623_v32 = vpop.xlane.xlu0 %622 }
 0x2c0   : > { %v633_v33 = vsub.f32 %v385_v20, %v623_v32 }
 0x2c2   : > { %v637_v34 = vmul.f32 1.442695, %v633_v33 }
 0x2c3   : > { %v626_v35 = vpop.xlane.xlu1 %625 }
 0x2c4   : > { %2143 = vpow2.f32 %v637_v34  ;;  %v634_v36 = vsub.f32 %v462_v23, %v626_v35 }
 0x2c6   : > { %v639_v37 = vmul.f32 1.442695, %v634_v36 }
 0x2c7   : > { %v666_v38 = vpop.permute.xlu1 %665  ;;  %v629_v39 = vpop.xlane.xlu0 %628 }
 0x2c8   : > { %2145 = vpow2.f32 %v639_v37  ;;  %v635_v40 = vsub.f32 %v539_v26, %v629_v39  ;;  %2029 = vmatpush3.msra.mxu1 %v666_v38 }
 0x2c9   : > { %2038 = vmatprep.subr.mxu1 %v2183_v10 }
 0x2ca   : > { %v641_v41 = vmul.f32 1.442695, %v635_v40 }
 0x2cb   : > { %v632_v48 = vpop.xlane.xlu0 %631  ;;  %v818_v53 = vpop.permute.xlu1 %817 }
 0x2cc   : > { %2147 = vpow2.f32 %v641_v41  ;;  %v636_v49 = vsub.f32 %v616_v27, %v632_v48 }
 0x2ce   : > { %v2144_v42 = vpop.eup %2143  ;;  %v643_v50 = vmul.f32 1.442695, %v636_v49 }
 0x2cf   : > { %v645_v43 = vsel %vm620_vm3, %v2144_v42, 0.0  ;;  %v894_v54 = vpop.permute.xlu1 %893  ;;  %v972_v57 = vpop.permute.xlu0 %971 }
 0x2d0   : > { %646 = vadd.xlane.f32.xlu1 %v645_v43  ;;  %2149 = vpow2.f32 %v643_v50 }
 0x2d2   : > { %v2146_v44 = vpop.eup %2145 }
 0x2d3   : > { %v648_v45 = vsel %vm620_vm3, %v2146_v44, 0.0  ;;  %v1050_v55 = vpop.permute.xlu1 %1049 }
 0x2d4   : > { %649 = vadd.xlane.f32.xlu0 %v648_v45 }
 0x2d6   : > { %v2148_v46 = vpop.eup %2147 }
 0x2d7   : > { %v651_v47 = vsel %vm620_vm3, %v2148_v46, 0.0  ;;  %v1048_v56 = vpop.permute.xlu1 %1047 }
 0x2d8   : > { %652 = vadd.xlane.f32.xlu1 %v651_v47 }
 0x2da   : > { %v2150_v51 = vpop.eup %2149 }
 0x2db   : > { %v654_v52 = vsel %vm620_vm3, %v2150_v51, 0.0 }
 0x2e9   : > { %1205 = vrot.lane.b32.xlu1 %v2258_v13, %s2187_s6 }
 0x2ea   : > { %969 = vrot.lane.b32.xlu0 %v2255_v12, %s2188_s7 }
 0x2ed   : > { %1203 = vrot.lane.b32.xlu1 %v2258_v13, %s2188_s7 }
 0x309   : > { %655 = vadd.xlane.f32.xlu0 %v654_v52 }
 0x31f   : > { %1127 = vrot.lane.b32.xlu0 %v2260_v14, %s2187_s6 }
 0x323   : > { %1125 = vrot.lane.b32.xlu0 %v2260_v14, %s2188_s7 }
 0x35d   : > { %v647_v58 = vpop.xlane.xlu1 %646 }
 0x35e   : > { %2151 = vrcp.f32 %v647_v58 }
 0x361   : > { %v650_v59 = vpop.xlane.xlu0 %649 }
 0x362   : > { %2153 = vrcp.f32 %v650_v59 }
 0x365   : > { %v653_v60 = vpop.xlane.xlu1 %652  ;;  %v970_v3 = vpop.permute.xlu0 %969 }
 0x366   : > { %2155 = vrcp.f32 %v653_v60 }
 0x368   : > { %v2152_v61 = vpop.eup %2151 }
 0x369   : > { %v661_v62 = vmul.f32 %v2152_v61, %v2144_v42  ;;  %v1206_v9 = vpop.permute.xlu1 %1205 }
 0x36b   : > { %2031 = vmatmul.mubr.msk.f32.vlgmr.msra.gmra.mrb[4].mxu1 %vm620_vm3, %v661_v62 }
 0x36c   : > { %v2154_v63 = vpop.eup %2153  ;;  %2039 = vmatpush3.msra.mxu1 %v818_v53  ;;  %2040 = vmatprep.mubr.msk.f32.mxu1 %vm2184_vm1, %v2183_v10 }
 0x36d   : > { %v662_v0 = vmul.f32 %v2154_v63, %v2146_v44  ;;  %2048 = vmatprep.subr.mxu1 %v2183_v10  ;;  %v1204_v15 = vpop.permute.xlu1 %1203 }
 0x36f   : > { %2036 = vmatmul.mubr.msk.f32.vlgmr.msra.gmra.mrb[8].mxu0 %vm620_vm3, %v662_v0 }
 0x370   : > { %v2156_v1 = vpop.eup %2155  ;;  %2044 = vmatpush3.msra.mxu0 %v894_v54  ;;  %2045 = vmatprep.mubr.msk.f32.mxu0 %vm2184_vm1, %v2183_v10 }
 0x371   : > { %v663_v2 = vmul.f32 %v2156_v1, %v2148_v46  ;;  %2053 = vmatprep.subr.mxu0 %v2183_v10 }
 0x373   : > { %2041 = vmatmul.mubr.msk.f32.vlgmr.msra.gmra.mrb[6].mxu1 %vm620_vm3, %v663_v2 }
 0x374   : > { %2049 = vmatpush3.xpose.msk.msra.mxu1 %vm314_vm2, %v972_v57  ;;  %2050 = vmatprep.mubr.msk.f32.mxu1 %vm2184_vm1, %v2183_v10 }
 0x375   : > { %2058 = vmatprep.subr.mxu1 %v2183_v10 }
 0x377   : > { %2051 = vmatmul.mubr.msk.f32.vlgmr.msra.gmra.mrb[8].mxu1 %vm314_vm2, %v970_v3 }
 0x378   : > { %2060 = vmatprep.mubr.msk.f32.mxu1 %vm2184_vm1, %v2183_v10 }
 0x396   : > { %v656_v4 = vpop.xlane.xlu0 %655 }
 0x397   : > { %2157 = vrcp.f32 %v656_v4  ;;  %v309_v4 = vld [vmem:[%s2432_s2 + $0x10] sm:$0xff] }
 0x39a   : > { %v1128_v5 = vpop.permute.xlu0 %1127 }
 0x39b   : > { %2059 = vmatpush3.xpose.msk.msra.mxu1 %vm314_vm2, %v1128_v5  ;;  %v310_v5 = vld [vmem:[%s2432_s2 + $0x18] sm:$0xff] }
 0x39c   : > { %2068 = vmatprep.subr.mxu1 %v2183_v10 }
 0x39e   : > { %v1126_v6 = vpop.permute.xlu0 %1125 }
 0x39f   : > { %2061 = vmatmul.mubr.msk.f32.vlgmr.msra.gmra.mrb[10].mxu1 %vm314_vm2, %v1126_v6  ;;  %v2116_v6 = vpack.c.bf16 %v310_v5, %v309_v4 }
 0x3a0   : > { %2070 = vmatprep.mubr.msk.f32.mxu1 %vm2184_vm1, %v2183_v10 }
 0x3a1   : > { %v2158_v7 = vpop.eup %2157 }
 0x3a2   : > { %v664_v8 = vmul.f32 %v2158_v7, %v2150_v51  ;;  %v308_v7 = vld [vmem:[%s2432_s2 + $0x8] sm:$0xff] }
 0x3a4   : > { %2046 = vmatmul.mubr.msk.f32.vlgmr.msra.gmra.mrb[10].mxu0 %vm620_vm3, %v664_v8 }
 0x3a5   : > { %2054 = vmatpush3.xpose.msk.msra.mxu0 %vm314_vm2, %v1050_v55  ;;  %2055 = vmatprep.mubr.msk.f32.mxu0 %vm2184_vm1, %v2183_v10 }
 0x3a6   : > { %2063 = vmatprep.subr.mxu0 %v2183_v10 }
 0x3a8   : > { %2056 = vmatmul.mubr.msk.f32.vlgmr.msra.gmra.mrb[12].mxu0 %vm314_vm2, %v1048_v56 }
 0x3a9   : > { %2064 = vmatpush3.xpose.msk.msra.mxu0 %vm314_vm2, %v1206_v9  ;;  %2065 = vmatprep.mubr.msk.f32.mxu0 %vm2184_vm1, %v2183_v10 }
 0x3aa   : > { %2073 = vmatprep.subr.mxu0 %v2183_v10 }
 0x3ac   : > { %2066 = vmatmul.mubr.msk.f32.vlgmr.msra.gmra.mrb[14].mxu0 %vm314_vm2, %v1204_v15 }
 0x3ad   : > { %2075 = vmatprep.mubr.msk.f32.mxu0 %vm2184_vm1, %v2183_v10 }
 0x43e   : > { %v2357_v16 = vpop.f32.mrb[4].mxu1 }
 0x43f   : > { %v2032_v17 = vpop.f32.mrb[5].mxu1 }
 0x442   : > { %v2359_v18 = vpop.f32.mrb[8].mxu0 }
 0x443   : > { %v2037_v19 = vpop.f32.mrb[9].mxu0 }
 0x446   : > { %v2361_v20 = vpop.f32.mrb[6].mxu1 }
 0x447   : > { %v2042_v21 = vpop.f32.mrb[7].mxu1 }
 0x44a   : > { %v1043_v22 = vpop.f32.mrb[8].mxu1 }
 0x44b   : > { %v2052_v23 = vpop.f32.mrb[9].mxu1  ;;  %v1281_v24 = vsel %vm620_vm3, %v1043_v22, -inf }
 0x44c   : > { %1282 = vmax.xlane.f32.xlu0 %v1281_v24 }
 0x472   : > { %v1199_v25 = vpop.f32.mrb[10].mxu1 }
 0x473   : > { %v2062_v26 = vpop.f32.mrb[11].mxu1  ;;  %v1287_v27 = vsel %vm620_vm3, %v1199_v25, -inf }
 0x474   : > { %1288 = vmax.xlane.f32.xlu0 %v1287_v27 }
 0x477   : > { %v2365_v28 = vpop.f32.mrb[10].mxu0 }
 0x478   : > { %v2047_v29 = vpop.f32.mrb[11].mxu0 }
 0x47b   : > { %v1121_v30 = vpop.f32.mrb[12].mxu0 }
 0x47c   : > { %v2057_v31 = vpop.f32.mrb[13].mxu0  ;;  %v1284_v32 = vsel %vm620_vm3, %v1121_v30, -inf }
 0x47d   : > { %1285 = vmax.xlane.f32.xlu1 %v1284_v32 }
 0x47f   : > { %v1277_v33 = vpop.f32.mrb[14].mxu0 }
 0x480   : > { %v2067_v34 = vpop.f32.mrb[15].mxu0  ;;  %v1290_v35 = vsel %vm620_vm3, %v1277_v33, -inf }
 0x481   : > { %1291 = vmax.xlane.f32.xlu0 %v1290_v35 }
 0x48e   : > { %1325 = vrot.lane.b32.xlu1 %v2255_v12, %s2189_s8 }
 0x4d9   : > { %v1283_v36 = vpop.xlane.xlu0 %1282 }
 0x4da   : > { %v1293_v37 = vsub.f32 %v1043_v22, %v1283_v36 }
 0x4dc   : > { %v1297_v38 = vmul.f32 1.442695, %v1293_v37 }
 0x4de   : > { %2159 = vpow2.f32 %v1297_v38 }
 0x4e8   : > { %v2160_v39 = vpop.eup %2159 }
 0x4e9   : > { %v1305_v40 = vsel %vm620_vm3, %v2160_v39, 0.0 }
 0x4ea   : > { %1306 = vadd.xlane.f32.xlu1 %v1305_v40 }
 0x4fb   : > { %1477 = vrot.lane.b32.xlu1 %v2260_v14, %s2189_s8 }
 0x501   : > { %v1289_v41 = vpop.xlane.xlu0 %1288 }
 0x502   : > { %v1295_v42 = vsub.f32 %v1199_v25, %v1289_v41  ;;  %v1939_v25 = vld [vmem:[%s2433_s3] ss:$0 sm:$0xff] }
 0x504   : > { %v1301_v45 = vmul.f32 1.442695, %v1295_v42 }
 0x50a   : > { %v1286_v43 = vpop.xlane.xlu1 %1285 }
 0x50b   : > { %v1294_v44 = vsub.f32 %v1121_v30, %v1286_v43 }
 0x50d   : > { %v1299_v46 = vmul.f32 1.442695, %v1294_v44 }
 0x50e   : > { %v1326_v47 = vpop.permute.xlu1 %1325  ;;  %v1292_v48 = vpop.xlane.xlu0 %1291 }
 0x50f   : > { %2161 = vpow2.f32 %v1299_v46  ;;  %v1296_v12 = vsub.f32 %v1277_v33, %v1292_v48  ;;  %2069 = vmatpush3.msra.mxu1 %v1326_v47 }
 0x510   : > { %2078 = vmatprep.subr.mxu1 %v2183_v10  ;;  %2163 = vpow2.f32 %v1301_v45 }
 0x511   : > { %v1303_v49 = vmul.f32 1.442695, %v1296_v12 }
 0x513   : > { %2165 = vpow2.f32 %v1303_v49 }
 0x519   : > { %v2162_v50 = vpop.eup %2161 }
 0x51a   : > { %v1308_v51 = vsel %vm620_vm3, %v2162_v50, 0.0  ;;  %v2164_v14 = vpop.eup %2163 }
 0x51b   : > { %1309 = vadd.xlane.f32.xlu0 %v1308_v51  ;;  %v1311_v53 = vsel %vm620_vm3, %v2164_v14, 0.0 }
 0x51d   : > { %v2166_v52 = vpop.eup %2165 }
 0x51e   : > { %v1314_v54 = vsel %vm620_vm3, %v2166_v52, 0.0 }
 0x51f   : > { %1312 = vadd.xlane.f32.xlu1 %v1311_v53  ;;  %1315 = vadd.xlane.f32.xlu0 %v1314_v54 }
 0x530   : > { %1553 = vrot.lane.b32.xlu1 %v2258_v13, %s2189_s8 }
 0x535   : > { %1401 = vrot.lane.b32.xlu0 %v2253_v11, %s2189_s8 }
 0x577   : > { %v1307_v55 = vpop.xlane.xlu1 %1306 }
 0x578   : > { %2167 = vrcp.f32 %v1307_v55 }
 0x57b   : > { %v1478_v58 = vpop.permute.xlu1 %1477 }
 0x582   : > { %v2168_v56 = vpop.eup %2167 }
 0x583   : > { %v1321_v57 = vmul.f32 %v2168_v56, %v2160_v39 }
 0x585   : > { %2071 = vmatmul.mubr.msk.f32.vlgmr.msra.gmra.mrb[12].mxu1 %vm620_vm3, %v1321_v57 }
 0x586   : > { %2079 = vmatpush3.msra.mxu1 %v1478_v58  ;;  %2080 = vmatprep.mubr.msk.f32.mxu1 %vm2184_vm1, %v2183_v10 }
 0x587   : > { %2117 = vmatprep.subr.bf16.mxu1 %v2116_v6 }
 0x5a8   : > { %v1310_v59 = vpop.xlane.xlu0 %1309 }
 0x5a9   : > { %2169 = vrcp.f32 %v1310_v59 }
 0x5ac   : > { %v1313_v60 = vpop.xlane.xlu1 %1312  ;;  %v1316_v61 = vpop.xlane.xlu0 %1315 }
 0x5ad   : > { %2171 = vrcp.f32 %v1313_v60 }
 0x5ae   : > { %2173 = vrcp.f32 %v1316_v61 }
 0x5b0   : > { %v1402_v13 = vpop.permute.xlu0 %1401  ;;  %v1554_v63 = vpop.permute.xlu1 %1553 }
 0x5b1   : > { %2074 = vmatpush3.msra.mxu0 %v1402_v13 }
 0x5b2   : > { %2083 = vmatprep.subr.mxu0 %v2183_v10 }
 0x5b3   : > { %v2170_v11 = vpop.eup %2169 }
 0x5b4   : > { %v1322_v62 = vmul.f32 %v2170_v11, %v2162_v50 }
 0x5b6   : > { %2076 = vmatmul.mubr.msk.f32.vlgmr.msra.gmra.mrb[16].mxu0 %vm620_vm3, %v1322_v62 }
 0x5b7   : > { %v2172_v0 = vpop.eup %2171  ;;  %2084 = vmatpush3.msra.mxu0 %v1554_v63  ;;  %2085 = vmatprep.mubr.msk.f32.mxu0 %vm2184_vm1, %v2183_v10  ;;  %v307_v10 = vld [vmem:[%s2432_s2] sm:$0xff] }
 0x5b8   : > { %v2174_v1 = vpop.eup %2173  ;;  %v1323_v2 = vmul.f32 %v2172_v0, %v2164_v14  ;;  %v2120_v8 = vpack.c.bf16 %v308_v7, %v307_v10 }
 0x5b9   : > { %v1324_v3 = vmul.f32 %v2174_v1, %v2166_v52 }
 0x5ba   : > { %2081 = vmatmul.mubr.msk.f32.vlgmr.msra.gmra.mrb[14].mxu1 %vm620_vm3, %v1323_v2 }
 0x5bb   : > { %2086 = vmatmul.mubr.msk.f32.vlgmr.msra.gmra.mrb[18].mxu0 %vm620_vm3, %v1324_v3  ;;  %2119 = vmatpush3.bf16.msra.mxu1 %v2116_v6 }
 0x5bc   : > { %2121 = vmatprep.subr.bf16.mxu1 %v2120_v8 }
 0x658   : > { %v1397_v9 = vpop.f32.mrb[12].mxu1 }
 0x659   : > { %v2072_v15 = vpop.f32.mrb[13].mxu1  ;;  %2092 = vmatprep.mubr.msk.f32.mxu1 %vm314_vm2, %v1397_v9 }
 0x689   : > { %v1473_v17 = vpop.f32.mrb[16].mxu0 }
 0x68a   : > { %v2077_v19 = vpop.f32.mrb[17].mxu0  ;;  %2093 = vmatmul.mubr.msk.f32.vlgmr.msra.gmra.mrb[16].mxu1 %vm314_vm2, %v1473_v17 }
 0x68b   : > { %2123 = vmatpush3.bf16.msra.mxu1 %v2120_v8 }
 0x68d   : > { %v1549_v21 = vpop.f32.mrb[14].mxu1 }
 0x68e   : > { %v1625_v22 = vpop.f32.mrb[18].mxu0  ;;  %v2082_v23 = vpop.f32.mrb[15].mxu1  ;;  %2095 = vmatprep.mubr.msk.f32.mxu1 %vm314_vm2, %v1549_v21 }
 0x68f   : > { %v2087_v24 = vpop.f32.mrb[19].mxu0  ;;  %2096 = vmatmul.mubr.msk.f32.gmra.mrb[18].mxu1 %vm314_vm2, %v1625_v22 }
 0x690   : > { %2102 = vmatprep.mubr.msk.f32.mxu1 %vm314_vm2, %v2357_v16 }
 0x693   : > { %2103 = vmatmul.mubr.msk.f32.vlgmr.msra.gmra.mrb[16].mxu1 %vm314_vm2, %v2359_v18 }
 0x694   : > { %2105 = vmatprep.mubr.msk.f32.mxu1 %vm314_vm2, %v2361_v20 }
 0x697   : > { %2106 = vmatmul.mubr.msk.f32.gmra.mrb[18].mxu1 %vm314_vm2, %v2365_v28 }
 0x766   : > { %v2104_v26 = vpop.f32.mrb[16].mxu1 }
 0x767   : > { %v1804_v16 = vpop.f32.mrb[17].mxu1  ;;  %v1831_v29 = vadd.f32 %v2104_v26, %v1939_v25 }
 0x768   : > { %v1830_v27 = vadd.f32 %v1939_v25, %v1804_v16 }
 0x769   : > { %1835 = vst.msk [vmem:[%s199_s22 + $0x8] sm:$0xff] %vm209_vm0, %v1831_v29 }
 0x76a   : > { %1834 = vst.msk [vmem:[%s199_s22] sm:$0xff] %vm209_vm0, %v1830_v27  ;;  %v2107_v18 = vpop.f32.mrb[18].mxu1 }
 0x76b   : > { %v1814_v20 = vpop.f32.mrb[19].mxu1  ;;  %v1833_v30 = vadd.f32 %v2107_v18, %v1939_v25 }
 0x76c   : > { %v1832_v28 = vadd.f32 %v1939_v25, %v1814_v20 }
 0x76d   : > { %1837 = vst.msk [vmem:[%s199_s22 + $0x18] sm:$0xff] %vm209_vm0, %v1833_v30 }
 0x76e   : > { %1836 = vst.msk [vmem:[%s199_s22 + $0x10] sm:$0xff] %vm209_vm0, %v1832_v28 }
 0x76f PF: > { %s14_s15 = sadd.s32 1, %s2181_s15  }
 0x770   : > { %p11_p4 = scmp.ge.s32.totalorder %s14_s15, 4  }
 0x772   :  { %13 = sbr.rel (!%p11_p4) target bundleno = 1 (0x1), region = 66 }

</bundles_post_ra>
